<compile_context>
chip_gen: v7x
topology: tpu7x:2x2x1
jax: 0.10.0
libtpu: 0.0.40
codegen_flags: <defaults>
</compile_context>

<pallas_src>
import jax
import jax.numpy as jnp
from jax import lax
from jax.experimental import pallas as pl
from jax.experimental.pallas import tpu as pltpu


# ----------------------------------------------------------------------------
# helpers
# ----------------------------------------------------------------------------
def _vmem_limit_bytes():
    """Chip-aware scoped-VMEM limit: physical minus headroom, capped at 96 MiB
    (=> ~56 MiB on v7x's 64 MiB/TC, 96 MiB on v5e/v6e's 128 MiB)."""
    try:
        cap = int(pltpu.get_tpu_info().vmem_capacity_bytes)
    except Exception:  # pragma: no cover - info query unavailable
        cap = 128 << 20
    return int(min(max(cap - (8 << 20), 32 << 20), 96 << 20))


def _largest_divisor_tile(total, multiple, max_elems, prefer_two_steps=False):
    """Largest divisor of `total` that is a multiple of `multiple` and
    <= max_elems.  Falls back to the full dim when `total` is not a multiple
    of `multiple` (full-extent blocks are always legal)."""
    if total % multiple != 0:
        return total
    cap = max(multiple, min(max_elems, total))
    if prefer_two_steps and total // 2 >= multiple:
        cap = min(cap, total // 2)      # leave >=2 grid steps when possible
    best = None
    d = multiple
    while d <= cap:
        if total % d == 0:
            best = d
        d += multiple
    return best if best is not None else total


def _bf16_representable(a):
    """Round-trip through bf16 so the bf16 MXU path is bit-lossless (test only)."""
    return a.astype(jnp.bfloat16).astype(jnp.float32)


# ----------------------------------------------------------------------------
# Conv2d(C, C, 3, stride=2, padding=1) path
# ----------------------------------------------------------------------------
def _conv_down_kernel(w_ref, b_ref, p_ref, o_ref):
    # w_ref: (TCO, 9*Cin)      bf16   -- folded-tap weights
    # b_ref: (TCO, 1)          f32
    # p_ref: (1, 9*Cin, TS)    bf16   -- im2col patches, spatial on lanes
    # o_ref: (1, TCO, TS)             -- channels-major (NCHW-native) output
    acc = jnp.dot(w_ref[...], p_ref[0], preferred_element_type=jnp.float32)
    o_ref[0] = (acc + b_ref[...]).astype(o_ref.dtype)


def _downsample_conv(x_nchw, w_oihw, bias):
    n, cin, h, w = x_nchw.shape
    cout = w_oihw.shape[0]
    assert h % 2 == 0 and w % 2 == 0, "even spatial dims required"
    ho, wo = h // 2, w // 2
    s = ho * wo
    k9 = 9 * cin

    # One fused pre-pass: pad + 9-tap stride-2 gather (im2col) + bf16 cast.
    # Result stays NCHW-native: (N, 9*Cin, Ho*Wo), spatial flattened on lanes.
    xpad = jnp.pad(x_nchw, ((0, 0), (0, 0), (1, 1), (1, 1)))
    taps = [xpad[:, :, kh:kh + 2 * ho:2, kw:kw + 2 * wo:2]
            for kh in range(3) for kw in range(3)]
    patches = jnp.stack(taps, axis=1).reshape(n, k9, s).astype(jnp.bfloat16)

    # Weights folded to (Cout, 9*Cin) with matching (kh, kw, Cin) ordering.
    w2 = jnp.transpose(w_oihw, (0, 2, 3, 1)).reshape(cout, k9).astype(jnp.bfloat16)
    b2 = bias.reshape(cout, 1).astype(jnp.float32)

    # Spatial tile (lane dim): multiple of 128 (or full dim), ~8 MiB bf16 patch
    # block.  Only force >=2 spatial tiles when N==1 (megacore still gets work).
    ts = _largest_divisor_tile(s, 128, max(128, (8 << 20) // (k9 * 2)),
                               prefer_two_steps=(n == 1))
    # Cout tile (sublane dim): multiple of 16 (bf16 packing) or full dim; keeps
    # the double-buffered weight block well inside v7x's 64 MiB VMEM.
    tco = _largest_divisor_tile(cout, 16, max(16, (8 << 20) // (k9 * 2)))

    out = pl.pallas_call(
        _conv_down_kernel,
        out_shape=jax.ShapeDtypeStruct((n, cout, s), x_nchw.dtype),
        grid_spec=pltpu.PrefetchScalarGridSpec(
            num_scalar_prefetch=0,
            grid=(n, s // ts, cout // tco),
            in_specs=[
                pl.BlockSpec((tco, k9), lambda i, j, c: (c, 0)),      # weights
                pl.BlockSpec((tco, 1), lambda i, j, c: (c, 0)),       # bias
                pl.BlockSpec((1, k9, ts), lambda i, j, c: (i, 0, j)),  # patches
            ],
            out_specs=pl.BlockSpec((1, tco, ts), lambda i, j, c: (i, c, j)),
        ),
        compiler_params=pltpu.CompilerParams(
            dimension_semantics=("parallel", "parallel", "parallel"),
            vmem_limit_bytes=_vmem_limit_bytes()),
    )(w2, b2, patches)

    # Free reshape back to NCHW (no transpose pass needed).
    return out.reshape(n, cout, ho, wo)


# ----------------------------------------------------------------------------
# AvgPool2d(kernel=2, stride=2) path
# ----------------------------------------------------------------------------
def _avgpool_down_kernel(x_ref, pool_ref, o_ref):
    # x_ref:    (TR, k*2W)   -- k packed (row-pair) rows, fully lane-dense
    # pool_ref: (k*2W, k*Wo) -- constant block-diagonal 0.25 pooling matrix
    # o_ref:    (TR, k*Wo)
    o_ref[...] = jnp.dot(x_ref[...], pool_ref[...],
                         preferred_element_type=jnp.float32).astype(o_ref.dtype)


def _downsample_avgpool(x_nchw):
    n, c, h, w = x_nchw.shape
    assert h % 2 == 0 and w % 2 == 0, "even spatial dims required"
    ho, wo = h // 2, w // 2
    r = n * c * ho                                   # one row per (n, c, out-row)
    itemsize = jnp.dtype(x_nchw.dtype).itemsize
    sub = max(8, 32 // itemsize)                     # sublane multiple: f32 8 / bf16 16 / int8 32

    # Lane packing: fold k output rows per kernel row so stores are lane-dense
    # even when Wo (or C) is small.  k*Wo capped at ~64 lanes so the redundant
    # block-diagonal MACs stay off v5e's f32-emulated-MXU roofline, and capped
    # so that >= 2 grid steps of >= sub rows remain for pipelining/megacore.
    kmax = max(1, 64 // max(wo, 1))
    kmax = min(kmax, max(1, r // (2 * sub)))
    k = 1
    for cand in range(kmax, 0, -1):
        if r % cand == 0:
            k = cand
            break
    rp = r // k

    xr = x_nchw.reshape(rp, k * 2 * w)               # free reshape (no data movement)

    # Pooling matrix: out[:, m*Wo+j] = 0.25 * sum of the four 2x2 inputs.
    j_of = (jnp.arange(2 * w) % w) // 2
    pool = ((j_of[:, None] == jnp.arange(wo)[None, :]) * 0.25).astype(x_nchw.dtype)
    pool = jnp.kron(jnp.eye(k, dtype=x_nchw.dtype), pool)   # (k*2W, k*Wo)

    tr = _largest_divisor_tile(rp, sub,
                               max(sub, (8 << 20) // (k * 2 * w * itemsize)),
                               prefer_two_steps=True)

    out2 = pl.pallas_call(
        _avgpool_down_kernel,
        out_shape=jax.ShapeDtypeStruct((rp, k * wo), x_nchw.dtype),
        grid_spec=pltpu.PrefetchScalarGridSpec(
            num_scalar_prefetch=0,
            grid=(rp // tr,),
            in_specs=[pl.BlockSpec((tr, k * 2 * w), lambda i: (i, 0)),
                      pl.BlockSpec((k * 2 * w, k * wo), lambda i: (0, 0))],
            out_specs=pl.BlockSpec((tr, k * wo), lambda i: (i, 0)),
        ),
        compiler_params=pltpu.CompilerParams(
            dimension_semantics=("parallel",),
            vmem_limit_bytes=_vmem_limit_bytes()),
    )(xr, pool)
    return out2.reshape(n, c, ho, wo)                # free reshape back to NCHW


# ----------------------------------------------------------------------------
# Module wrapper
# ----------------------------------------------------------------------------
class Downsample:
    """Pallas port of the PyTorch Downsample module (dims=2)."""

    def __init__(self, channels, use_conv, dims=2, key=None):
        assert dims == 2  # TODO(synk): dims=1/3 paths not implemented
        self.channels = channels
        self.use_conv = use_conv
        self.dims = dims
        if use_conv:
            key = jax.random.PRNGKey(0) if key is None else key
            kw_, kb_ = jax.random.split(key)
            fan_in = channels * 3 * 3
            bound = 1.0 / (fan_in ** 0.5)
            self.w = jax.random.uniform(kw_, (channels, channels, 3, 3),
                                        jnp.float32, -bound, bound)
            self.b = jax.random.uniform(kb_, (channels,), jnp.float32, -bound, bound)

    def __call__(self, x_nchw):
        assert x_nchw.shape[1] == self.channels
        if self.use_conv:
            return _downsample_conv(x_nchw, self.w, self.b)
        return _downsample_avgpool(x_nchw)


# ----------------------------------------------------------------------------
# self-test
# ----------------------------------------------------------------------------
if __name__ == "__main__":
    key = jax.random.PRNGKey(0)
    kx, kp = jax.random.split(key)
    N, C, H, W = 2, 4, 16, 16

    # bf16-representable f32 inputs so the kernel's bf16 MXU path is lossless
    # and the reference checks below can stay tight.
    x = _bf16_representable(jax.random.normal(kx, (N, C, H, W), jnp.float32))

    # use_conv=True path: Conv2d(C, C, 3, stride=2, padding=1)
    down_conv = Downsample(C, use_conv=True, dims=2, key=kp)
    down_conv.w = _bf16_representable(down_conv.w)
    down_conv.b = _bf16_representable(down_conv.b)
    y_conv = jax.block_until_ready(down_conv(x))
    ref_conv = lax.conv_general_dilated(
        x, down_conv.w, window_strides=(2, 2), padding=((1, 1), (1, 1)),
        dimension_numbers=("NCHW", "OIHW", "NCHW"),
    ) + down_conv.b.reshape(1, -1, 1, 1)
    assert y_conv.shape == (N, C, H // 2, W // 2)
    assert jnp.allclose(y_conv, ref_conv, atol=1e-4, rtol=1e-4)

    # use_conv=False path: AvgPool2d(kernel=2, stride=2)
    down_pool = Downsample(C, use_conv=False, dims=2)
    y_pool = jax.block_until_ready(down_pool(x))
    ref_pool = x.reshape(N, C, H // 2, 2, W // 2, 2).mean(axis=(3, 5))
    assert y_pool.shape == (N, C, H // 2, W // 2)
    assert jnp.allclose(y_pool, ref_pool, atol=1e-5, rtol=1e-5)

    print("KERNEL_OK")
</pallas_src>

<mosaic_0001>
module attributes {stable_mosaic.version = 11 : i64} {
  func.func @_conv_down_kernel(%arg0: i32, %arg1: i32, %arg2: i32, %arg3: memref<4x36xbf16, #tpu.memory_space<vmem>>, %arg4: memref<4x1xf32, #tpu.memory_space<vmem>>, %arg5: memref<1x36x64xbf16, #tpu.memory_space<vmem>>, %arg6: memref<1x4x64xf32, #tpu.memory_space<vmem>>) attributes {dimension_semantics = [#tpu.dimension_semantics<parallel>, #tpu.dimension_semantics<parallel>, #tpu.dimension_semantics<parallel>], iteration_bounds = array<i64: 2, 1, 1>, scalar_prefetch = 0 : i64, scratch_operands = 0 : i64, tpu.core_type = #tpu.core_type<tc>, window_params = [{transform_indices = @transform_0, window_bounds = array<i64: 4, 36>}, {transform_indices = @transform_1, window_bounds = array<i64: 4, 1>}, {transform_indices = @transform_2, window_bounds = array<i64: 1, 36, 64>}, {transform_indices = @transform_3, window_bounds = array<i64: 1, 4, 64>}]} {
    %c0 = arith.constant 0 : index
    %c0_0 = arith.constant 0 : index
    %0 = vector.load %arg3[%c0, %c0_0] : memref<4x36xbf16, #tpu.memory_space<vmem>>, vector<4x36xbf16>
    %c0_1 = arith.constant 0 : index
    %c0_2 = arith.constant 0 : index
    %c0_3 = arith.constant 0 : index
    %1 = vector.load %arg5[%c0_1, %c0_2, %c0_3] : memref<1x36x64xbf16, #tpu.memory_space<vmem>>, vector<1x36x64xbf16>
    %2 = vector.shape_cast %1 : vector<1x36x64xbf16> to vector<36x64xbf16>
    %cst = arith.constant dense<0.000000e+00> : vector<4x64xf32>
    %3 = tpu.matmul %0, %2, %cst {dimension_numbers = #tpu.dot_dimension_numbers<[1], [0], [0], [1], [0, 0, 1, 1], [], []>} : vector<4x36xbf16>, vector<36x64xbf16>, vector<4x64xf32> -> vector<4x64xf32>
    %c0_4 = arith.constant 0 : index
    %c0_5 = arith.constant 0 : index
    %4 = vector.load %arg4[%c0_4, %c0_5] : memref<4x1xf32, #tpu.memory_space<vmem>>, vector<4x1xf32>
    %5 = vector.broadcast %4 : vector<4x1xf32> to vector<4x64xf32>
    %6 = arith.addf %3, %5 : vector<4x64xf32>
    %c0_6 = arith.constant 0 : index
    %c0_7 = arith.constant 0 : index
    %c0_8 = arith.constant 0 : index
    %7 = vector.load %arg6[%c0_6, %c0_7, %c0_8] : memref<1x4x64xf32, #tpu.memory_space<vmem>>, vector<1x4x64xf32>
    %8 = vector.shape_cast %7 : vector<1x4x64xf32> to vector<4x64xf32>
    %9 = vector.shape_cast %6 : vector<4x64xf32> to vector<1x4x64xf32>
    tpu.vector_store %arg6[%c0_6, %c0_7, %c0_8], %9 {strides = array<i32>} : memref<1x4x64xf32, #tpu.memory_space<vmem>>, vector<1x4x64xf32>,
    return
  }
  func.func @transform_0(%arg0: i32, %arg1: i32, %arg2: i32) -> (i32, i32) {
    %c0_i32 = arith.constant 0 : i32
    %c0_i32_0 = arith.constant 0 : i32
    return %arg2, %c0_i32 : i32, i32
  }
  func.func @transform_1(%arg0: i32, %arg1: i32, %arg2: i32) -> (i32, i32) {
    %c0_i32 = arith.constant 0 : i32
    %c0_i32_0 = arith.constant 0 : i32
    return %arg2, %c0_i32 : i32, i32
  }
  func.func @transform_2(%arg0: i32, %arg1: i32, %arg2: i32) -> (i32, i32, i32) {
    %c0_i32 = arith.constant 0 : i32
    %c0_i32_0 = arith.constant 0 : i32
    return %arg0, %c0_i32, %arg1 : i32, i32, i32
  }
  func.func @transform_3(%arg0: i32, %arg1: i32, %arg2: i32) -> (i32, i32, i32) {
    %c0_i32 = arith.constant 0 : i32
    return %arg0, %arg2, %arg1 : i32, i32, i32
  }
}

</mosaic_0001>

<bundles_post_ra>
// kernel: tpu_custom_call.1
= control target key start
LH: loop header
LB: loop body
LE: loop exit
PB: predicated region body
PF: predicated region fallthrough
CT: control target
= control target key end

     0   :  { %8 = vsyncpa [#allocation3], 0  ;;  %s1041_s0 = inlined_call_operand.hbm [shape: bf16[4,36], index: 0, kind: input, shape index: {}]   ;;  %s1042_s1 = inlined_call_operand.hbm [shape: f32[4,1], index: 1, kind: input, shape index: {}]   ;;  %s1043_s2 = inlined_call_operand.hbm [shape: bf16[2,36,64], index: 2, kind: input, shape index: {}]   ;;  %s1044_s3 = inlined_call_operand.hbm [shape: f32[2,4,64], index: 3, kind: output, shape index: {}]  }
   0x1   :  { %9 = vsyncpa [#allocation6], 0 }
   0x2   :  { %10 = vsyncpa [#allocation4], 0 }
   0x3   :  { %12 = vsyncpa [#allocation4 + $0x1], 0  ;;  %s789_s12 = smov 0   ;;  %s791_s13 = smov 0  }
   0x4   :  { %s793_s14 = smov 0   ;;  %s795_s15 = smov 0  }
   0x5   :  { %s797_s16 = smov 0   ;;  %s799_s17 = smov 0  }
   0x6 LB: > { %s820_s18 = sadd.s32 4294967295, %s758_s17   ;;  %s455_s19 = sadd.s32 4294967294, %s758_s17   ;;  %s758_s17 = sphi %s799_s17, %s18_s17   ;;  %s754_s16 = sphi %s797_s16, %s1071_s16   ;;  %s750_s15 = sphi %s795_s15, %s1070_s15   ;;  %s746_s14 = sphi %s793_s14, %s1069_s14   ;;  %s742_s13 = sphi %s791_s13, %s1068_s13   ;;  %s738_s12 = sphi %s789_s12, %s1067_s12  }
   0x7   : > { %s98_s20 = sadd.s32 1, %s746_s14  ;;  %p105_p0 = scmp.ne.s32.totalorder %s746_s14, %s742_s13 }
   0x8   : > { %p106_p1 = scmp.eq.s32.totalorder %s758_s17, 0  ;;  %p111_p2 = scmp.ne.s32.totalorder %s742_s13, %s738_s12 }
   0x9   : > { %p1045_p3 = scmp.eq.s32.totalorder %s820_s18, 0  ;;  %p139_p4 = scmp.eq.s32.totalorder %s820_s18, 1 }
   0xa   : > { %p831_p5 = por %p106_p1, %p105_p0  ;;  %p145_p6 = scmp.eq.s32.totalorder %s455_s19, 1 }
   0xb   : > { %p837_p7 = por %p1045_p3, %p111_p2  ;;  %p841_p8 = por %p139_p4, %p105_p0 }
   0xc   : > { %p845_p9 = por %p145_p6, %p111_p2  ;;  %p456_p10 = scmp.ge.s32.totalorder %s758_s17, 1 }
   0xd   : > { %s1051_s22 = scalar_select %p837_p7, 1, 0 }
   0xe   : > { %s1052_s23 = scalar_select %p841_p8, 1, 0 }
   0xf   : > { %s1053_s24 = scalar_select %p845_p9, 1, 0 }
  0x10   : > { %p152_p11 = scmp.lt.s32.totalorder %s758_s17, 3  ;;  %s760_s26 = smov [#allocation2]  }
  0x11   : > { %s167_s27 = sshll.u32 %s760_s26, 4  ;;  %p519_p1 = scmp.lt.s32.totalorder %s758_s17, 2  ;;  %s168_s27 = int_to_ptr.vmem [resolvable:$true] %s167_s27 }
  0x12   : > { %p852_p13 = pnand %p456_p10, %p152_p11  ;;  %s761_s29 = smov [#allocation5]  }
  0x13   : > { %p861_p4 = pnand %p519_p1, %p831_p5  ;;  %s180_s30 = sshll.u32 %s761_s29, 4  ;;  %s871_s30 = int_to_ptr.vmem [resolvable:$true] %s180_s30 }
  0x14   : > { %s1054_s25 = scalar_select %p852_p13, 1, 0 }
  0x15   : > { %p502_p0 = pneg %p852_p13  ;;  %s582_s7 = scalar_lea.hbm %s1041_s0, 32 }
  0x16   : > { %s1055_s28 = scalar_select %p861_p4, 1, 0 }
  0x17   : > { %p867_p2 = pnand %p502_p0, %p1045_p3  ;;  %p583_p5 = scmp.ne.s32.totalorder %s1041_s0, %s582_s7 }
  0x18   : > { %p589_p1 = scmp.lt.u32.totalorder %s582_s7, %s1041_s0 }
  0x19   : > { %p584_p6 = pneg %p867_p2 }
  0x1b   : > { %p585_p10 = pnand %p584_p6, %p583_p5 }
  0x1d   : > { %p586_p11 = pneg %p585_p10 }
  0x1f   : > { %p591_p0 = pnand %p589_p1, %p586_p11 }
  0x21   : > { %594 = shalt.err (!%p591_p0)
}
  0x22   : > { %s595_s19 = scalar_lea.vmem %s168_s27, 32  ;;  %p603_p8 = scmp.lt.s32.totalorder %s168_s27, %s168_s27 }
  0x23   : > { %p596_p12 = scmp.ne.s32.totalorder %s168_s27, %s595_s19  ;;  %p604_p7 = scmp.lt.s32.totalorder %s595_s19, %s595_s19 }
  0x25   : > { %p598_p3 = pnand %p596_p12, %p584_p6  ;;  %p605_p13 = por %p604_p7, %p603_p8 }
  0x27   : > { %p599_p9 = pneg %p598_p3 }
  0x29   : > { %p606_p4 = pnand %p605_p13, %p599_p9 }
  0x2b   : > { %609 = shalt.err (!%p606_p4)
}
  0x2c   : > { %505 = dma.hbm_to_vmem [thread:$0]  (!%p867_p2), %s1041_s0, 32, %s168_s27, [#allocation3]  }
  0x2d   : > { %s610_s6 = scalar_lea.hbm %s1042_s1, 64 }
  0x2e   : > { %p611_p3 = scmp.ne.s32.totalorder %s1042_s1, %s610_s6  ;;  %p617_p9 = scmp.lt.u32.totalorder %s610_s6, %s1042_s1 }
  0x30   : > { %p613_p7 = pnand %p611_p3, %p584_p6 }
  0x32   : > { %p614_p8 = pneg %p613_p7 }
  0x34   : > { %p619_p12 = pnand %p617_p9, %p614_p8 }
  0x36   : > { %622 = shalt.err (!%p619_p12)
}
  0x37   : > { %s623_s27 = scalar_lea.vmem %s871_s30, 64  ;;  %p631_p10 = scmp.lt.s32.totalorder %s871_s30, %s871_s30 }
  0x38   : > { %p624_p13 = scmp.ne.s32.totalorder %s871_s30, %s623_s27  ;;  %p632_p11 = scmp.lt.s32.totalorder %s623_s27, %s623_s27 }
  0x3a   : > { %p626_p4 = pnand %p624_p13, %p584_p6  ;;  %p633_p1 = por %p632_p11, %p631_p10 }
  0x3c   : > { %p627_p5 = pneg %p626_p4 }
  0x3e   : > { %p634_p0 = pnand %p633_p1, %p627_p5 }
  0x40   : > { %637 = shalt.err (!%p634_p0)
}
  0x41   : > { %508 = dma.hbm_to_vmem [thread:$0]  (!%p867_p2), %s1042_s1, 64, %s871_s30, [#allocation6]  }
  0x42   : > { %s37_s21 = sadd.s32 1, %s754_s16  ;;  %s191_s26 = sand.u32 1, %s758_s17  }
  0x43   : > { %p39_p6 = scmp.ge.s32.totalorder %s37_s21, 2  ;;  %s193_s29 = sand.u32 1, %s746_s14  }
  0x44   : > { %s488_s5 = smul.u32 320, %s754_s16  ;;  %s940_s11 = scalar_lea.sflag [#allocation3], %s191_s26 }
  0x45   : > { %s1073_s21 = smov (%p39_p6, %s37_s21), 0  ;;  %s487_s4 = smul.u32 20, %s193_s29 }
  0x46   : > { %s929_s8 = scalar_lea.hbm %s1043_s2, %s488_s5  ;;  %s93_s30 = ssub.s32 %s754_s16, %s1073_s21 }
  0x47   : > { %p96_p2 = scmp.eq.s32.totalorder %s93_s30, 0  ;;  %s195_s9 = scalar_lea.vmem [#allocation7], %s487_s4 }
  0x48   : > { %s203_s10 = sshll.u32 %s195_s9, 4  ;;  %s638_s19 = scalar_lea.hbm %s929_s8, 320  ;;  %s938_s10 = int_to_ptr.vmem [resolvable:$true] %s203_s10 }
  0x49   : > { %s936_s27 = scalar_select %p96_p2, %s746_s14, %s98_s20  }
  0x4a   : > { %p639_p3 = scmp.ne.s32.totalorder %s929_s8, %s638_s19  ;;  %p1057_p7 = scmp.ne.s32.totalorder %s1055_s28, 0 }
  0x4b   : > { %s643_s4 = scalar_lea.hbm %s1043_s2, 640  ;;  %p644_p13 = scmp.lt.u32.totalorder %s929_s8, %s1043_s2 }
  0x4c   : > { %p640_p8 = pneg %p1057_p7  ;;  %p645_p4 = scmp.lt.u32.totalorder %s643_s4, %s638_s19 }
  0x4d   : > { %p647_p10 = scmp.lt.u32.totalorder %s638_s19, %s929_s8 }
  0x4e   : > { %p641_p9 = pnand %p640_p8, %p639_p3  ;;  %p646_p5 = por %p645_p4, %p644_p13 }
  0x50   : > { %p642_p12 = pneg %p641_p9  ;;  %p648_p11 = por %p647_p10, %p646_p5 }
  0x52   : > { %p649_p1 = pnand %p648_p11, %p642_p12 }
  0x54   : > { %652 = shalt.err (!%p649_p1)
}
  0x55   : > { %s653_s20 = scalar_lea.vmem %s938_s10, 320  ;;  %s762_s26 = smov [#allocation7]  }
  0x56   : > { %p654_p0 = scmp.ne.s32.totalorder %s938_s10, %s653_s20  ;;  %s658_s30 = sshll.u32 %s762_s26, 4  ;;  %s659_s30 = int_to_ptr.vmem [resolvable:$false] %s658_s30 }
  0x57   : > { %s660_s9 = scalar_lea.vmem %s659_s30, 640  ;;  %p661_p3 = scmp.lt.s32.totalorder %s938_s10, %s659_s30 }
  0x58   : > { %p656_p6 = pnand %p654_p0, %p640_p8  ;;  %p662_p9 = scmp.lt.s32.totalorder %s660_s9, %s653_s20 }
  0x5a   : > { %p657_p2 = pneg %p656_p6  ;;  %p663_p13 = por %p662_p9, %p661_p3 }
  0x5c   : > { %p664_p4 = pnand %p663_p13, %p657_p2 }
  0x5e   : > { %667 = shalt.err (!%p664_p4)
}
  0x5f   : > { %s763_s19 = smov 64   ;;  %s764_s29 = smov 4  }
  0x60   : > { %512 = dma.hbm_to_vmem [thread:$0]  (!%p1057_p7), %s929_s8, 320, %s938_s10, %s940_s11, %s763_s19, %s763_s19, %s764_s29  }
  0x61   : > { %p1058_p8 = scmp.ne.s32.totalorder %s1054_s25, 0 }
  0x62   : > { %p1059_p12 = scmp.eq.s32.totalorder (!%p1058_p8), %s820_s18, 0 }
  0x63   : > { %215 = sbr.rel (%p1058_p8) target bundleno = 357 (0x165), region = 32 }
  0x6a   : > { %721 = dma.done.wait (%p1059_p12), [#allocation3], 32   ;;  %p1060_p5 = pmov %p1059_p12 }
  0x6c   : > { %723 = vsyncadd (%p1060_p5), [#allocation3], 4294967264  ;;  %p1061_p10 = pmov %p1060_p5 }
  0x6d   : > { %p1062_p11 = pmov %p1060_p5 }
  0x6e   : > { %725 = dma.done.wait (%p1061_p10), [#allocation6], 64  }
  0x6f   : > { %727 = vsyncadd (%p1062_p11), [#allocation6], 4294967232  ;;  %s225_s28 = sand.u32 1, %s820_s18   ;;  %s980_s8 = sand.u32 1, %s742_s13  }
  0x70   : > { %s489_s25 = smul.u32 20, %s980_s8  ;;  %s226_s10 = scalar_lea.sflag [#allocation3], %s225_s28 }
  0x71   : > { %p1063_p7 = scmp.ne.s32.totalorder %s1051_s22, 0 }
  0x72   : > { %s229_s11 = scalar_lea.vmem [#allocation7], %s489_s25 }
  0x73   : > { %729 = dma.done.wait (%p1063_p7), %s226_s10, 320  }
  0x74   : > { %731 = vsyncadd (%p1063_p7), %s226_s10, 4294966976  ;;  %v765_v0 = vmov 0.0   ;;  %vm766_vm0 = vmmov 0   ;;  %v767_v1 = vmov 0   ;;  %v579_v2 = vld [vmem:[%s229_s11] sm:$0xff]   ;;  %v580_v3 = vld [vmem:[%s229_s11 + $0x8] sm:$0xff]  }
  0x75   : > { %477 = vmatprep.subr.bf16.mxu0 %v765_v0  ;;  %483 = vmatprep.mubr.msk.bf16.mxu0 %vm766_vm0, %v765_v0  ;;  %v581_v4 = vld [vmem:[%s229_s11 + $0x10] ss:$0 sps:$4 sm:$0x33]   ;;  %v259_v5 = vld [vmem:[#allocation5] sm:$0xf]  ;;  %vm284_vm1 = vcmask 1041408  }
  0x76   : > { %578 = vset.pattern.permute.xlu0 %v767_v1  ;;  %478 = vmatpush3.bf16.msra.mxu0 %v579_v2  ;;  %v286_v6 = vsel %vm284_vm1, %v581_v4, 0  ;;  %v253_v7 = vld [vmem:[#allocation2] sm:$0x3]  ;;  %vm280_vm2 = vcmask 293888   ;;  %s464_s18 = sshll.u32 %s980_s8, 2  ;;  %s470_s22 = sshll.u32 %s750_s15, 6 }
  0x77   : > { %479 = vmatprep.subr.bf16.mxu0 %v765_v0  ;;  %262 = vperm.xlu0 %578, %v259_v5   ;;  %s251_s5 = scalar_lea.vmem [#allocation8], %s464_s18  ;;  %vm328_vm3 = vcmask 519168   ;;  %s992_s20 = scalar_lea.hbm %s1044_s3, %s470_s22 }
  0x78   : > { %s346_s4 = sshll.u32 %s251_s5, 4  ;;  %s331_s15 = scalar_lea.sflag [#allocation4], %s980_s8  ;;  %s994_s4 = int_to_ptr.vmem [resolvable:$true] %s346_s4 }
  0x79   : > { %s668_s26 = scalar_lea.vmem %s994_s4, 64  ;;  %p1064_p0 = scmp.ne.s32.totalorder %s1052_s23, 0 }
  0x7a   : > { %480 = vmatpush3.bf16.msra.mxu0 %v580_v3  ;;  %p669_p1 = scmp.ne.s32.totalorder %s994_s4, %s668_s26  ;;  %s768_s30 = smov [#allocation8]  }
  0x7b   : > { %481 = vmatprep.subr.bf16.mxu0 %v765_v0  ;;  %s672_s9 = sshll.u32 %s768_s30, 4  ;;  %s673_s9 = int_to_ptr.vmem [resolvable:$false] %s672_s9 }
  0x7c   : > { %p670_p6 = pnand %p669_p1, %p1064_p0  ;;  %s674_s19 = scalar_lea.vmem %s673_s9, 128 }
  0x7d   : > { %p675_p3 = scmp.lt.s32.totalorder %s994_s4, %s673_s9  ;;  %p676_p9 = scmp.lt.s32.totalorder %s674_s19, %s668_s26 }
  0x7e   : > { %482 = vmatpush3.bf16.msra.mxu0 %v286_v6  ;;  %p671_p2 = pneg %p670_p6 }
  0x7f   : > { %p677_p13 = por %p676_p9, %p675_p3 }
  0x81   : > { %484 = vmatmul.mubr.msk.bf16.vlgmr.msra.gmra.mrb[0].mxu0 %vm280_vm2, %v253_v7  ;;  %p678_p4 = pnand %p677_p13, %p671_p2 }
  0xf6   : > { %v263_v8 = vpop.permute.xlu0 %262 }
 0x154   : > { %v322_v9 = vpop.f32.mrb[0].mxu0 }
 0x155   : > { %v323_v10 = vadd.f32 %v322_v9, %v263_v8  ;;  %v485_v11 = vpop.f32.mrb[1].mxu0 }
 0x156   : > { %v325_v12 = vpop.f32.mrb[2].mxu0 }
 0x157   : > { %v486_v13 = vpop.f32.mrb[3].mxu0  ;;  %329 = vst.msk [vmem:[%s251_s5] sm:$0xf] %vm328_vm3, %v323_v10 }
 0x158   : > { %681 = shalt.err (!%p678_p4)
}
 0x159   : > { %s682_s29 = scalar_lea.hbm %s992_s20, 64  ;;  %s686_s25 = scalar_lea.hbm %s1044_s3, 128 }
 0x15a   : > { %p683_p8 = scmp.ne.s32.totalorder %s992_s20, %s682_s29  ;;  %p687_p10 = scmp.lt.u32.totalorder %s992_s20, %s1044_s3 }
 0x15b   : > { %p688_p11 = scmp.lt.u32.totalorder %s686_s25, %s682_s29  ;;  %p690_p1 = scmp.lt.u32.totalorder %s682_s29, %s992_s20 }
 0x15c   : > { %p684_p12 = pnand %p683_p8, %p1064_p0 }
 0x15d   : > { %p689_p7 = por %p688_p11, %p687_p10 }
 0x15e   : > { %p685_p5 = pneg %p684_p12 }
 0x15f   : > { %p691_p6 = por %p690_p1, %p689_p7 }
 0x161   : > { %p692_p2 = pnand %p691_p6, %p685_p5 }
 0x163   : > { %695 = shalt.err (!%p692_p2)
}
 0x164   : > { %500 = dma.vmem_to_hbm [thread:$0]  (%p1064_p0), %s994_s4, 64, %s992_s20, %s331_s15  }
 0x165 PF: > { %s358_s18 = sand.u32 1, %s738_s12   ;;  %p1065_p3 = scmp.ne.s32.totalorder %s1053_s24, 0 }
 0x166   : > { %p1066_p9 = scmp.ge.s32.totalorder %s758_s17, 2  ;;  %s359_s22 = scalar_lea.sflag [#allocation4], %s358_s18 }
 0x168   : > { %p514_p13 = pnand %p1066_p9, %p1065_p3 }
 0x16a   : > { %733 = dma.done.wait (!%p514_p13), %s359_s22, 64  }
 0x16b   : > { %735 = vsyncadd (!%p514_p13), %s359_s22, 4294967232  ;;  %s18_s17 = sadd.s32 1, %s758_s17   ;;  %s1067_s12 = smov %s742_s13 }
 0x16c   : > { %p15_p4 = scmp.ge.s32.totalorder %s18_s17, 4   ;;  %s1068_s13 = smov %s746_s14 }
 0x16d   : > { %s1069_s14 = smov %s936_s27  ;;  %s1070_s15 = smov %s754_s16 }
 0x16e   : > { %s1071_s16 = smov %s1073_s21  ;;  %17 = sbr.rel (!%p15_p4) target bundleno = 6 (0x6), region = 86 }
 0x175   :  { %364 = vsyncpa [#allocation3], 1 }
 0x176   :  { %366 = vsyncpa [#allocation3 + $0x1], 1 }
 0x177   :  { %367 = vsyncpa [#allocation6], 1 }
 0x178   :  { %368 = vsyncpa [#allocation4], 1 }
 0x179   :  { %370 = vsyncpa [#allocation4 + $0x1], 1 }

</bundles_post_ra>
